<compile_context>
chip_gen: v5e
topology: v5e:2x2
jax: 0.10.0
libtpu: 0.0.40
codegen_flags: <defaults>
</compile_context>

<pallas_src>
import functools

import jax
import jax.numpy as jnp
from jax.experimental import pallas as pl
from jax.experimental.pallas import tpu as pltpu

LANE = 128


def _round_up(x, m):
    return ((x + m - 1) // m) * m


def _group_ce_kernel(logits_ref, labels_ref, out_ref, *,
                     label_smoothing, n_valid, block_n, needs_mask):
    # logits_ref: (C, TN) input dtype; labels_ref: (1, TN) int32
    # out_ref:    (1, LANE) f32 -- this grid step's partial sum, broadcast.
    x = logits_ref[...].astype(jnp.float32)                    # (C, TN)
    labels = labels_ref[...]                                   # (1, TN)
    C = x.shape[0]

    # Numerically stable logsumexp over the class (sublane) axis.
    m = jnp.max(x, axis=0, keepdims=True)                      # (1, TN)
    lse = m + jnp.log(jnp.sum(jnp.exp(x - m), axis=0, keepdims=True))

    # Target logit via compare+select (VPU), then a C-row sublane add.
    # (C is tiny, so this is intentionally NOT routed through the MXU.)
    class_ids = jax.lax.broadcasted_iota(jnp.int32, x.shape, 0)
    onehot = (class_ids == labels).astype(jnp.float32)          # (C, TN)
    x_target = jnp.sum(onehot * x, axis=0, keepdims=True)       # (1, TN)

    nll = lse - x_target                                        # (1, TN)

    ls = float(label_smoothing)
    if ls != 0.0:  # statically skipped in the common no-smoothing case
        sum_x = jnp.sum(x, axis=0, keepdims=True)
        smooth = lse - sum_x * (1.0 / C)
        per_elem = (1.0 - ls) * nll + ls * smooth
    else:
        per_elem = nll

    if needs_mask:  # only traced when the lane axis was padded
        col = (pl.program_id(0) * block_n
               + jax.lax.broadcasted_iota(jnp.int32, per_elem.shape, 1))
        per_elem = jnp.where(col < n_valid, per_elem, 0.0)

    # One partial sum per grid step, broadcast across a full 128-lane row so the
    # store is lane-dense and each step owns a distinct output block.
    out_ref[...] = jnp.full((1, LANE), jnp.sum(per_elem), dtype=jnp.float32)


def group_cross_entropy(y_pred, y_true, *, num_classes_in_group, num_classes,
                        label_smoothing=0.0, block_n=4096):
    """y_pred: (B, num_classes_in_group * num_classes) float logits
       y_true: (B, num_classes) int labels in [0, num_classes_in_group)
       returns scalar mean cross-entropy loss (f32)."""
    B = y_pred.shape[0]
    C = int(num_classes_in_group)
    D = int(num_classes)
    N = B * D

    # (B, C*D) -> (B, C, D) -> (C, B, D) -> (C, N): class dim on sublanes,
    # flattened (batch, group) dim dense on the 128-wide lane axis.
    # Keep the input dtype (e.g. bf16) -- the kernel casts to f32 internally.
    logits = jnp.transpose(y_pred.reshape(B, C, D), (1, 0, 2)).reshape(C, N)
    labels = y_true.astype(jnp.int32).reshape(1, N)

    tn = min(_round_up(N, LANE), _round_up(int(block_n), LANE))
    n_pad = _round_up(N, tn)
    grid = n_pad // tn
    needs_mask = (n_pad != N)

    if needs_mask:
        logits = jnp.pad(logits, ((0, 0), (0, n_pad - N)))
        labels = jnp.pad(labels, ((0, 0), (0, n_pad - N)))

    kernel = functools.partial(
        _group_ce_kernel,
        label_smoothing=label_smoothing,
        n_valid=N,
        block_n=tn,
        needs_mask=needs_mask,
    )

    partials = pl.pallas_call(
        kernel,
        out_shape=jax.ShapeDtypeStruct((1, grid * LANE), jnp.float32),
        grid_spec=pltpu.PrefetchScalarGridSpec(
            num_scalar_prefetch=0,
            grid=(grid,),
            in_specs=[
                pl.BlockSpec((C, tn), lambda i: (0, i)),
                pl.BlockSpec((1, tn), lambda i: (0, i)),
            ],
            out_specs=pl.BlockSpec((1, LANE), lambda i: (0, i)),
        ),
        compiler_params=pltpu.CompilerParams(
            dimension_semantics=("parallel",)),
    )(logits, labels)

    # One broadcast partial per grid step lives in each 128-lane segment;
    # pick lane 0 of each segment, sum, and apply the 'mean' reduction.
    return jnp.sum(partials[0, ::LANE]) * (1.0 / N)


def _reference_loss(y_pred, y_true, C, D, label_smoothing=0.0):
    B = y_pred.shape[0]
    logits = y_pred.reshape(B, C, D).astype(jnp.float32)
    logp = jax.nn.log_softmax(logits, axis=1)                   # (B, C, D)
    onehot = jax.nn.one_hot(y_true, C, axis=1, dtype=jnp.float32)
    nll = -jnp.sum(onehot * logp, axis=1)
    smooth = -jnp.mean(logp, axis=1)
    per_elem = (1.0 - label_smoothing) * nll + label_smoothing * smooth
    return jnp.mean(per_elem)


if __name__ == "__main__":
    # cfg.architecture.num_classes_in_group = 4 (softmax/class dim)
    # cfg.architecture.num_classes = 16 (group / "spatial" dim)
    B, C, D = 8, 4, 16

    key = jax.random.PRNGKey(0)
    k1, k2 = jax.random.split(key)
    y_pred = jax.random.normal(k1, (B, C * D), dtype=jnp.float32)
    y_true = jax.random.randint(k2, (B, D), 0, C, dtype=jnp.int32)

    loss = group_cross_entropy(
        y_pred, y_true, num_classes_in_group=C, num_classes=D,
        label_smoothing=0.0)
    loss = jax.block_until_ready(loss)

    ref = _reference_loss(y_pred, y_true, C, D)
    assert jnp.allclose(loss, ref, rtol=1e-5, atol=1e-5), (loss, ref)

    print("KERNEL_OK")
</pallas_src>

<mosaic_0001>
module attributes {stable_mosaic.version = 11 : i64} {
  func.func @_group_ce_kernel(%arg0: i32, %arg1: memref<4x128xf32, #tpu.memory_space<vmem>>, %arg2: memref<1x128xi32, #tpu.memory_space<vmem>>, %arg3: memref<1x128xf32, #tpu.memory_space<vmem>>) attributes {dimension_semantics = [#tpu.dimension_semantics<parallel>], iteration_bounds = array<i64: 1>, scalar_prefetch = 0 : i64, scratch_operands = 0 : i64, tpu.core_type = #tpu.core_type<tc>, window_params = [{transform_indices = @transform_0, window_bounds = array<i64: 4, 128>}, {transform_indices = @transform_1, window_bounds = array<i64: 1, 128>}, {transform_indices = @transform_2, window_bounds = array<i64: 1, 128>}]} {
    %c0 = arith.constant 0 : index
    %c0_0 = arith.constant 0 : index
    %0 = vector.load %arg1[%c0, %c0_0] : memref<4x128xf32, #tpu.memory_space<vmem>>, vector<4x128xf32>
    %c0_1 = arith.constant 0 : index
    %c0_2 = arith.constant 0 : index
    %1 = vector.load %arg2[%c0_1, %c0_2] : memref<1x128xi32, #tpu.memory_space<vmem>>, vector<1x128xi32>
    %cst = arith.constant dense<0xFF800000> : vector<128xf32>
    %2 = vector.multi_reduction <maximumf>, %0, %cst [0] : vector<4x128xf32> to vector<128xf32>
    %3 = vector.shape_cast %2 : vector<128xf32> to vector<1x128xf32>
    %4 = vector.broadcast %3 : vector<1x128xf32> to vector<4x128xf32>
    %5 = arith.subf %0, %4 : vector<4x128xf32>
    %6 = math.exp %5 : vector<4x128xf32>
    %cst_3 = arith.constant dense<0.000000e+00> : vector<128xf32>
    %7 = vector.multi_reduction <add>, %6, %cst_3 [0] : vector<4x128xf32> to vector<128xf32>
    %8 = vector.shape_cast %7 : vector<128xf32> to vector<1x128xf32>
    %9 = math.log %8 : vector<1x128xf32>
    %10 = arith.addf %3, %9 : vector<1x128xf32>
    %11 = tpu.iota {dimensions = array<i32: 0>} : vector<4x128xi32>
    %12 = vector.broadcast %1 : vector<1x128xi32> to vector<4x128xi32>
    %13 = arith.cmpi eq, %11, %12 : vector<4x128xi32>
    %14 = arith.extui %13 : vector<4x128xi1> to vector<4x128xi32>
    %15 = arith.sitofp %14 : vector<4x128xi32> to vector<4x128xf32>
    %16 = arith.mulf %15, %0 : vector<4x128xf32>
    %cst_4 = arith.constant dense<0.000000e+00> : vector<128xf32>
    %17 = vector.multi_reduction <add>, %16, %cst_4 [0] : vector<4x128xf32> to vector<128xf32>
    %18 = vector.shape_cast %17 : vector<128xf32> to vector<1x128xf32>
    %19 = arith.subf %10, %18 : vector<1x128xf32>
    %20 = vector.shape_cast %19 : vector<1x128xf32> to vector<1x1x128xf32>
    %cst_5 = arith.constant dense<0.000000e+00> : vector<1xf32>
    %21 = vector.multi_reduction <add>, %20, %cst_5 [1, 2] : vector<1x1x128xf32> to vector<1xf32>
    %22 = vector.shape_cast %21 : vector<1xf32> to vector<1x1x1xf32>
    %23 = vector.extract %22[0, 0, 0] : f32 from vector<1x1x1xf32>
    %24 = vector.broadcast %23 : f32 to vector<1x128xf32>
    %c0_6 = arith.constant 0 : index
    %c0_7 = arith.constant 0 : index
    %25 = vector.load %arg3[%c0_6, %c0_7] : memref<1x128xf32, #tpu.memory_space<vmem>>, vector<1x128xf32>
    tpu.vector_store %arg3[%c0_6, %c0_7], %24 {strides = array<i32>} : memref<1x128xf32, #tpu.memory_space<vmem>>, vector<1x128xf32>,
    return
  }
  func.func @transform_0(%arg0: i32) -> (i32, i32) {
    %c0_i32 = arith.constant 0 : i32
    %c0_i32_0 = arith.constant 0 : i32
    return %c0_i32, %arg0 : i32, i32
  }
  func.func @transform_1(%arg0: i32) -> (i32, i32) {
    %c0_i32 = arith.constant 0 : i32
    %c0_i32_0 = arith.constant 0 : i32
    return %c0_i32, %arg0 : i32, i32
  }
  func.func @transform_2(%arg0: i32) -> (i32, i32) {
    %c0_i32 = arith.constant 0 : i32
    %c0_i32_0 = arith.constant 0 : i32
    return %c0_i32, %arg0 : i32, i32
  }
}

</mosaic_0001>

<bundles_post_ra>
// kernel: tpu_custom_call.1
= control target key start
LH: loop header
LB: loop body
LE: loop exit
PB: predicated region body
PF: predicated region fallthrough
CT: control target
= control target key end

     0   :  { %7 = vsyncpa [#allocation3], 0  ;;  %s230_s0 = inlined_call_operand.hbm [shape: f32[4,128], index: 0, kind: input, shape index: {}]   ;;  %s231_s1 = inlined_call_operand.hbm [shape: s32[1,128], index: 1, kind: input, shape index: {}]   ;;  %s232_s2 = inlined_call_operand.hbm [shape: f32[1,128], index: 2, kind: output, shape index: {}]  }
   0x1   :  { %8 = vsyncpa [#allocation6], 0 }
   0x2   :  { %9 = vsyncpa [#allocation4], 0  ;;  %s15_s11 = sshll.u32 %s230_s0, 4  ;;  %s199_s12 = smov [#allocation2]   ;;  %s16_s11 = int_to_ptr.hbm [resolvable:$true] %s15_s11 }
   0x3   :  { %s17_s13 = sshll.u32 %s199_s12, 4  ;;  %s26_s16 = sshll.u32 %s231_s1, 4  ;;  %s18_s13 = int_to_ptr.vmem [resolvable:$true] %s17_s13  ;;  %s27_s16 = int_to_ptr.hbm [resolvable:$true] %s26_s16 }
   0x4   :  { %20 = dma.hbm_to_vmem [thread:$0]  %s16_s11, 64, %s18_s13, [#allocation3]  }
   0x5   :  { %s200_s17 = smov [#allocation5]  }
   0x6   :  { %s28_s18 = sshll.u32 %s200_s17, 4  ;;  %s29_s18 = int_to_ptr.vmem [resolvable:$true] %s28_s18 }
   0x7   :  { %31 = dma.hbm_to_vmem [thread:$0]  %s27_s16, 16, %s29_s18, [#allocation6]  }
   0x8   :  { %193 = dma.done.wait [#allocation3], 64  }
   0x9   :  { %194 = vsyncadd [#allocation3], 4294967232 }
   0xa   :  { %195 = dma.done.wait [#allocation6], 16  }
   0xb   :  { %196 = vsyncadd [#allocation6], 4294967280  ;;  %vm42_vm0 = vcmask 1043456   ;;  %v40_v0 = vld [vmem:[#allocation2] sm:$0xf]  ;;  %v63_v4 = vlaneseq  ;;  %v201_v12 = vmov 0.0  }
   0xc   :  { %v43_v1 = vsel %vm42_vm0, %v40_v0, -inf  ;;  %v116_v8 = vld [vmem:[#allocation5] ss:$0 sm:$0xff]  ;;  %vm78_vm2 = vcmask 1040384   ;;  %s202_s0 = smov [#allocation7]   ;;  %s98_s21 = sshll.u32 %s232_s2, 4  ;;  %s99_s21 = int_to_ptr.hbm [resolvable:$true] %s98_s21 }
   0xd   :  { %v44_v2 = vrot.slane %v43_v1, 4  ;;  %v64_v7 = vshrl.u32 %v63_v4, 7  ;;  %s96_s1 = sshll.u32 %s202_s0, 4  ;;  %s97_s1 = int_to_ptr.vmem [resolvable:$true] %s96_s1 }
   0xf   :  { %v45_v3 = vmax.f32 %v43_v1, %v44_v2  ;;  %vm66_vm1 = vcmp.eq.s32.totalorder %v64_v7, %v116_v8 }
  0x10   :  { %v109_v13 = vsel %vm66_vm1, 1.0, %v201_v12 }
  0x11   :  { %v46_v5 = vrot.slane %v45_v3, 2  ;;  %v69_v15 = vmul.f32 %v109_v13, %v40_v0 }
  0x13   :  { %v47_v6 = vmax.f32 %v45_v3, %v46_v5  ;;  %v70_v16 = vsel %vm42_vm0, %v69_v15, 0.0 }
  0x14   :  { %v71_v19 = vrot.slane %v70_v16, 4 }
  0x15   :  { %v48_v9 = vrot.slane %v47_v6, 1 }
  0x16   :  { %v72_v22 = vadd.f32 %v71_v19, %v70_v16 }
  0x17   :  { %v49_v10 = vmax.f32 %v47_v6, %v48_v9 }
  0x18   :  { %v73_v25 = vrot.slane %v72_v22, 2 }
  0x19   :  { %v50_v11 = vsub.f32 %v40_v0, %v49_v10 }
  0x1a   :  { %v74_v28 = vadd.f32 %v73_v25, %v72_v22 }
  0x1b   :  { %v51_v14 = vmul.f32 1.442695, %v50_v11 }
  0x1c   :  { %v75_v29 = vrot.slane %v74_v28, 1 }
  0x1d   :  { %117 = vpow2.f32 %v51_v14 }
  0x1e   :  { %v76_v32 = vadd.f32 %v75_v29, %v74_v28 }
  0x23   :  { %v118_v17 = vpop.eup %117 }
  0x24   :  { %v53_v18 = vsel %vm42_vm0, %v118_v17, 0.0 }
  0x25   :  { %v54_v20 = vrot.slane %v53_v18, 4 }
  0x27   :  { %v55_v21 = vadd.f32 %v54_v20, %v53_v18 }
  0x29   :  { %v56_v23 = vrot.slane %v55_v21, 2 }
  0x2b   :  { %v57_v24 = vadd.f32 %v56_v23, %v55_v21 }
  0x2d   :  { %v58_v26 = vrot.slane %v57_v24, 1 }
  0x2f   :  { %v59_v27 = vadd.f32 %v58_v26, %v57_v24 }
  0x31   :  { %119 = vlog2.f32 %v59_v27 }
  0x37   :  { %v120_v30 = vpop.eup %119 }
  0x38   :  { %v61_v31 = vmul.f32 0.6931472, %v120_v30 }
  0x3a   :  { %v62_v33 = vadd.f32 %v61_v31, %v49_v10 }
  0x3c   :  { %v77_v34 = vsub.f32 %v62_v33, %v76_v32 }
  0x3e   :  { %v79_v35 = vsel %vm78_vm2, %v77_v34, 0.0 }
  0x3f   :  { %80 = vadd.xlane.f32.xlu0 %v79_v35 }
  0xb2   :  { %v81_v36 = vpop.xlane.xlu0 %80 }
  0xb3   :  { %v82_v37 = vrot.slane %v81_v36, 4 }
  0xb5   :  { %v83_v38 = vadd.f32 %v82_v37, %v81_v36 }
  0xb7   :  { %v84_v39 = vrot.slane %v83_v38, 2 }
  0xb9   :  { %v85_v40 = vadd.f32 %v84_v39, %v83_v38 }
  0xbb   :  { %v86_v41 = vrot.slane %v85_v40, 1 }
  0xbd   :  { %v87_v42 = vadd.f32 %v86_v41, %v85_v40 }
  0xbf   :  { %110 = vpush %v87_v42 }
  0xf0   :  { %s111_s22 = spop %110 }
  0xf1   :  { %v89_v43 = vstv %s111_s22 }
  0xf2   :  { %90 = vst [vmem:[#allocation7] sm:$0x1] %v89_v43 }
  0xf3   :  { %101 = dma.vmem_to_hbm [thread:$0]  %s97_s1, 16, %s99_s21, [#allocation4]  }
  0xf4   :  { %197 = dma.done.wait [#allocation4], 16  }
  0xf5   :  { %198 = vsyncadd [#allocation4], 4294967280 }
  0xf6   :  { %106 = vsyncpa [#allocation3], 1 }
  0xf7   :  { %107 = vsyncpa [#allocation6], 1 }
  0xf8   :  { %108 = vsyncpa [#allocation4], 1 }

</bundles_post_ra>
